<compile_context>
chip_gen: v7x
topology: tpu7x:2x2x1
jax: 0.10.0
libtpu: 0.0.40
codegen_flags: <defaults>
</compile_context>

<pallas_src>
import functools
import itertools
import math
import re

import jax
import jax.numpy as jnp
from jax import lax
from jax.experimental import pallas as pl
from jax.experimental.pallas import tpu as pltpu


# Padding sentinel for batch rows (applied AFTER the 1/sqrt(ksize) prescale).
# Power of two -> exact in f32/bf16, so pad-vs-pad distances cancel to exactly
# 0 (each contributing exactly exp(0)=1, removed analytically in the wrapper),
# while real-vs-pad distances are huge and exp() underflows to exactly 0.
# Assumes |prescaled data| << 16384, which holds for any data the original
# torch module could handle without its own exp underflow.
_PAD_VALUE = 16384.0


def _round_up(v, m):
    return -(-v // m) * m


def _tpu_generation():
    try:
        kind = jax.devices()[0].device_kind.lower()
    except Exception:
        return 0
    m = re.search(r"(\d+)", kind)
    return int(m.group(1)) if m else 0


def _vmem_limit_bytes(gen):
    cap = None
    try:  # generation-aware physical VMEM (v7x only has 64 MiB per TC)
        cap = int(pltpu.get_tpu_info().vmem_capacity_bytes)
    except Exception:
        cap = None
    if cap is None:
        cap = (64 << 20) if gen >= 7 else (128 << 20)
    return min((cap * 3) // 4, 96 << 20)


def _choose_tile(batch, feat, itemsize, budget_bytes):
    """Largest Gram tile (multiple of 128 lanes) that divides the padded batch
    and fits the VMEM budget (double-buffered input tiles + f32 Gram temps)."""
    def fits(t):
        inputs = 2 * 2 * t * feat * itemsize          # a/b tiles, double-buffered
        gram = 4 * t * t * 4                          # ab / d2 / g (+ headroom)
        small = 2 * (2 * t * 4) + 2 * (8 * t * 4)     # row/col norms, out block
        return inputs + gram + small <= budget_bytes

    t_budget = 512
    while t_budget > 128 and not fits(t_budget):
        t_budget //= 2

    b_pad = _round_up(batch, 128)
    tile = 128
    cand = 128
    while cand <= min(t_budget, b_pad):
        if b_pad % cand == 0:
            tile = cand
        cand += 128
    return tile, b_pad


def _gram_partial_kernel(i_idx_ref, j_idx_ref, a_ref, b_ref, sqa_ref, sqb_ref,
                         o_ref, *, tile, matmul_dtype, exp_dtype):
    """One (tile x tile) block of the Gram matrix of work item p.

    Accumulates per-(item, row_tile) partial sums into the (1, 1, 8, tile)
    output block using only sublane-major vreg adds (no in-kernel cross-lane
    reduce, no SMEM scalar round trip)."""
    p = pl.program_id(0)
    r = pl.program_id(1)
    c = pl.program_id(2)

    @pl.when(c == 0)
    def _init():
        o_ref[...] = jnp.zeros_like(o_ref)

    is_self = i_idx_ref[p] == j_idx_ref[p]
    # Self Gram matrices are symmetric: only compute tile-blocks with c >= r
    # and double the strictly-upper ones.
    compute = jnp.logical_or(jnp.logical_not(is_self), c >= r)

    @pl.when(compute)
    def _block():
        a = a_ref[0].astype(matmul_dtype)
        b = b_ref[0].astype(matmul_dtype)
        a2 = a * jnp.asarray(2.0, matmul_dtype)          # fold the -2 coefficient
        # Contract the feature axis of BOTH operands -> MXU, f32 accumulate.
        ab2 = lax.dot_general(a2, b, (((1,), (1,)), ((), ())),
                              preferred_element_type=jnp.float32)
        sa = sqa_ref[0]                                   # (tile, 1) f32, hoisted
        sb = sqb_ref[0]                                   # (1, tile) f32, hoisted
        d2 = jnp.maximum(sa - ab2 + sb, 0.0)              # clamp cancellation
        g = jnp.exp((-d2).astype(exp_dtype)).astype(jnp.float32)
        w = jnp.where(jnp.logical_and(is_self, c > r), 2.0, 1.0)
        # (tile, tile) -> (tile//8, 8, tile) is a layout-free split of the
        # sublane-major axis; summing axis 0 lowers to pure vreg adds.
        rows = jnp.sum(g.reshape(tile // 8, 8, tile), axis=0)
        o_ref[...] += (w * rows)[None, None]


def multi_cs_gram_means(stacked, ksize, *, tile=None, precision="fast"):
    """Fused pallas_call: mean of the normalized Gaussian Gram matrix for all
    n self items and all C(n,2) cross pairs of the stacked [n, B, D]
    modalities.  Returns (items, means[num_items])."""
    n, batch, feat = stacked.shape
    items = [(i, i) for i in range(n)] + list(itertools.combinations(range(n), 2))
    num_items = len(items)
    i_idx = jnp.asarray([a for a, _ in items], dtype=jnp.int32)
    j_idx = jnp.asarray([b for _, b in items], dtype=jnp.int32)

    gen = _tpu_generation()
    vmem_limit = _vmem_limit_bytes(gen)
    if precision == "fast":
        matmul_dtype = jnp.bfloat16                      # MXU native on v5e/v6e/v7x
        exp_dtype = jnp.bfloat16 if gen >= 6 else jnp.float32  # bf16 EUP on v6e+
    else:
        matmul_dtype = jnp.float32
        exp_dtype = jnp.float32

    # Hoisted prescale: ||x - y||^2 / k == ||x/sqrt(k) - y/sqrt(k)||^2.  Keep
    # the native input dtype (no f32 upcast -> less HBM->VMEM traffic).
    xs = stacked * (1.0 / math.sqrt(float(ksize)))

    if tile is not None:
        if tile % 128 != 0:
            raise ValueError("tile must be a multiple of 128 (lane width)")
        t = int(tile)
        b_pad = _round_up(batch, t)
    else:
        t, b_pad = _choose_tile(batch, feat, jnp.dtype(xs.dtype).itemsize,
                                budget_bytes=(vmem_limit * 6) // 10)
    n_pad = b_pad - batch
    if n_pad:
        xs = jnp.pad(xs, ((0, 0), (0, n_pad), (0, 0)),
                     constant_values=_PAD_VALUE)

    # Hoisted per-row squared norms (f32) as tiny side inputs so the kernel
    # never recomputes them per column tile.
    sq = jnp.sum(xs.astype(jnp.float32) ** 2, axis=-1)    # [n, b_pad]
    sq_row = sq[:, :, None]                               # [n, b_pad, 1]
    sq_col = sq[:, None, :]                               # [n, 1, b_pad]

    n_tiles = b_pad // t
    kern = functools.partial(_gram_partial_kernel, tile=t,
                             matmul_dtype=matmul_dtype, exp_dtype=exp_dtype)

    grid_spec = pltpu.PrefetchScalarGridSpec(
        num_scalar_prefetch=2,
        grid=(num_items, n_tiles, n_tiles),
        in_specs=[
            pl.BlockSpec((1, t, feat), lambda p, r, c, ii, jj: (ii[p], r, 0)),
            pl.BlockSpec((1, t, feat), lambda p, r, c, ii, jj: (jj[p], c, 0)),
            pl.BlockSpec((1, t, 1), lambda p, r, c, ii, jj: (ii[p], r, 0)),
            pl.BlockSpec((1, 1, t), lambda p, r, c, ii, jj: (jj[p], 0, c)),
        ],
        out_specs=pl.BlockSpec((1, 1, 8, t),
                               lambda p, r, c, ii, jj: (p, r, 0, 0)),
    )

    partials = pl.pallas_call(
        kern,
        out_shape=jax.ShapeDtypeStruct((num_items, n_tiles, 8, t), jnp.float32),
        grid_spec=grid_spec,
        compiler_params=pltpu.CompilerParams(
            dimension_semantics=("parallel", "parallel", "arbitrary"),
            vmem_limit_bytes=vmem_limit),
    )(i_idx, j_idx, xs, xs, sq_row, sq_col)

    # Single cross-lane/sublane reduce, once, outside the kernel; then remove
    # the exactly-known pad-vs-pad contribution (n_pad^2 entries of exp(0)=1).
    raw = jnp.sum(partials, axis=(1, 2, 3)) - float(n_pad) * float(n_pad)
    norm = 1.0 / math.sqrt(2.0 * math.pi * float(ksize))
    means = raw * (norm / float(batch * batch))
    return items, means


def generalized_multi_cs_loss(modalities, ksize, pair_weights=None, *,
                              sigma=3.0, eps=1e-5, tile=None, precision="fast"):
    """sum over pairs (i<j): w_ij * log(sigma*sqrt(m_ii*m_jj+eps)/(m_ij+eps))."""
    # TODO(synk): the fused kernel assumes every modality shares the same [B, D].
    stacked = jnp.stack(list(modalities), axis=0)
    items, means = multi_cs_gram_means(stacked, ksize, tile=tile,
                                       precision=precision)
    self_mean = {a: means[idx] for idx, (a, b) in enumerate(items) if a == b}

    loss = jnp.float32(0.0)
    for idx, (a, b) in enumerate(items):
        if a == b:
            continue
        w = 1.0 if pair_weights is None else float(pair_weights.get((a, b), 1.0))
        term = jnp.log(sigma * jnp.sqrt(self_mean[a] * self_mean[b] + eps)
                       / (means[idx] + eps))
        loss = loss + w * term
    return loss


def multics_loss(X, Y, Z, ksize, *, tile=None, precision="fast"):
    """Mirror of multicsLoss.forward: r = r1*10 + r2 + r3*10."""
    return generalized_multi_cs_loss(
        [X, Y, Z], ksize,
        pair_weights={(0, 2): 10.0, (1, 2): 1.0, (0, 1): 10.0},
        tile=tile, precision=precision)


# ------------------------- pure-JAX reference ------------------------------
def _ref_get_kernel(Xm, Zm, ksize):
    G = jnp.sum((Xm[:, None, :] - Zm[None, :, :]) ** 2, axis=-1)
    return jnp.exp(-G / ksize) / math.sqrt(2.0 * math.pi * ksize)


def _ref_multics_loss(X, Y, Z, ksize, sigma=3.0):
    Gxx = _ref_get_kernel(X, X, ksize)
    Gzz = _ref_get_kernel(Z, Z, ksize)
    Gxz = _ref_get_kernel(X, Z, ksize)
    Gxy = _ref_get_kernel(X, Y, ksize)
    Gyy = _ref_get_kernel(Y, Y, ksize)
    Gyz = _ref_get_kernel(Y, Z, ksize)
    r1 = jnp.log(sigma * jnp.sqrt(jnp.mean(Gxx) * jnp.mean(Gzz) + 1e-5)
                 / (jnp.mean(Gxz) + 1e-5))
    r2 = jnp.log(sigma * jnp.sqrt(jnp.mean(Gyy) * jnp.mean(Gzz) + 1e-5)
                 / (jnp.mean(Gyz) + 1e-5))
    r3 = jnp.log(sigma * jnp.sqrt(jnp.mean(Gxx) * jnp.mean(Gyy) + 1e-5)
                 / (jnp.mean(Gxy) + 1e-5))
    return r1 * 10 + r2 + r3 * 10


if __name__ == "__main__":
    key = jax.random.PRNGKey(0)
    k1, k2, k3, k4, k5, k6 = jax.random.split(key, 6)

    # --- test 1: small shapes consistent with the module --------------------
    batch, feat, ksize = 24, 32, 32.0
    X = jax.random.normal(k1, (batch, feat), dtype=jnp.float32)
    Y = jax.random.normal(k2, (batch, feat), dtype=jnp.float32)
    Z = jax.random.normal(k3, (batch, feat), dtype=jnp.float32)
    ref = jax.block_until_ready(_ref_multics_loss(X, Y, Z, ksize))

    # Strict check: pure-f32 MXU/EUP path.
    loss_hi = jax.block_until_ready(
        multics_loss(X, Y, Z, ksize, precision="highest"))
    assert jnp.allclose(loss_hi, ref, rtol=1e-3, atol=1e-3), (loss_hi, ref)

    # Default fast path: bf16 MXU + generation-aware exp dtype.
    loss_fast = jax.block_until_ready(multics_loss(X, Y, Z, ksize))
    assert jnp.allclose(loss_fast, ref, rtol=5e-2, atol=5e-2), (loss_fast, ref)

    # --- test 2: forced tile=128 -> grid (6, 2, 2): exercises the symmetric
    # block skip/double path, output revisiting over the column axis, and the
    # padded-batch sentinel correction (b_pad=256, n_pad=56). -----------------
    batch2, feat2, ksize2 = 200, 64, 64.0
    X2 = jax.random.normal(k4, (batch2, feat2), dtype=jnp.float32)
    Y2 = jax.random.normal(k5, (batch2, feat2), dtype=jnp.float32)
    Z2 = jax.random.normal(k6, (batch2, feat2), dtype=jnp.float32)
    ref2 = jax.block_until_ready(_ref_multics_loss(X2, Y2, Z2, ksize2))
    loss2 = jax.block_until_ready(
        multics_loss(X2, Y2, Z2, ksize2, tile=128, precision="highest"))
    assert jnp.allclose(loss2, ref2, rtol=1e-3, atol=1e-3), (loss2, ref2)

    print("KERNEL_OK")
</pallas_src>

<mosaic_0001>
module attributes {stable_mosaic.version = 11 : i64} {
  func.func @_gram_partial_kernel(%arg0: i32, %arg1: i32, %arg2: i32, %arg3: memref<6xi32, #tpu.memory_space<smem>>, %arg4: memref<6xi32, #tpu.memory_space<smem>>, %arg5: memref<1x128x32xf32, #tpu.memory_space<vmem>>, %arg6: memref<1x128x32xf32, #tpu.memory_space<vmem>>, %arg7: memref<1x128x1xf32, #tpu.memory_space<vmem>>, %arg8: memref<1x1x128xf32, #tpu.memory_space<vmem>>, %arg9: memref<1x1x8x128xf32, #tpu.memory_space<vmem>>) attributes {dimension_semantics = [#tpu.dimension_semantics<parallel>, #tpu.dimension_semantics<parallel>, #tpu.dimension_semantics<arbitrary>], iteration_bounds = array<i64: 6, 1, 1>, scalar_prefetch = 2 : i64, scratch_operands = 0 : i64, tpu.core_type = #tpu.core_type<tc>, window_params = [{transform_indices = @transform_0, window_bounds = array<i64: 1, 128, 32>}, {transform_indices = @transform_1, window_bounds = array<i64: 1, 128, 32>}, {transform_indices = @transform_2, window_bounds = array<i64: 1, 128, 1>}, {transform_indices = @transform_3, window_bounds = array<i64: 1, 1, 128>}, {transform_indices = @transform_4, window_bounds = array<i64: 1, 1, 8, 128>}]} {
    %c0_i32 = arith.constant 0 : i32
    %0 = arith.cmpi eq, %arg2, %c0_i32 : i32
    %1 = arith.extui %0 : i1 to i32
    %c0_i32_0 = arith.constant 0 : i32
    %2 = arith.cmpi ne, %1, %c0_i32_0 : i32
    scf.if %2 {
      %cst = arith.constant 0.000000e+00 : f32
      %13 = vector.broadcast %cst : f32 to vector<1x1x8x128xf32>
      %c0 = arith.constant 0 : index
      %c0_2 = arith.constant 0 : index
      %c0_3 = arith.constant 0 : index
      %c0_4 = arith.constant 0 : index
      %14 = vector.load %arg9[%c0, %c0_2, %c0_3, %c0_4] : memref<1x1x8x128xf32, #tpu.memory_space<vmem>>, vector<1x1x8x128xf32>
      tpu.vector_store %arg9[%c0, %c0_2, %c0_3, %c0_4], %13 {strides = array<i32>} : memref<1x1x8x128xf32, #tpu.memory_space<vmem>>, vector<1x1x8x128xf32>,
    } else {
    }
    %3 = arith.index_cast %arg0 : i32 to index
    %4 = memref.load %arg3[%3] : memref<6xi32, #tpu.memory_space<smem>>
    %5 = arith.index_cast %arg0 : i32 to index
    %6 = memref.load %arg4[%5] : memref<6xi32, #tpu.memory_space<smem>>
    %7 = arith.cmpi eq, %4, %6 : i32
    %true = arith.constant true
    %8 = arith.xori %7, %true : i1
    %9 = arith.cmpi sge, %arg2, %arg1 : i32
    %10 = arith.ori %8, %9 : i1
    %11 = arith.extui %10 : i1 to i32
    %c0_i32_1 = arith.constant 0 : i32
    %12 = arith.cmpi ne, %11, %c0_i32_1 : i32
    scf.if %12 {
      %c0 = arith.constant 0 : index
      %c0_2 = arith.constant 0 : index
      %c0_3 = arith.constant 0 : index
      %13 = vector.load %arg5[%c0, %c0_2, %c0_3] : memref<1x128x32xf32, #tpu.memory_space<vmem>>, vector<1x128x32xf32>
      %14 = vector.shape_cast %13 : vector<1x128x32xf32> to vector<128x32xf32>
      %c0_4 = arith.constant 0 : index
      %c0_5 = arith.constant 0 : index
      %c0_6 = arith.constant 0 : index
      %15 = vector.load %arg6[%c0_4, %c0_5, %c0_6] : memref<1x128x32xf32, #tpu.memory_space<vmem>>, vector<1x128x32xf32>
      %16 = vector.shape_cast %15 : vector<1x128x32xf32> to vector<128x32xf32>
      %cst = arith.constant 2.000000e+00 : f32
      %17 = vector.broadcast %cst : f32 to vector<128x32xf32>
      %18 = arith.mulf %14, %17 : vector<128x32xf32>
      %cst_7 = arith.constant dense<0.000000e+00> : vector<128x128xf32>
      %19 = tpu.matmul %18, %16, %cst_7 {dimension_numbers = #tpu.dot_dimension_numbers<[1], [1], [0], [0], [0, 0, 1, 0], [], []>} : vector<128x32xf32>, vector<128x32xf32>, vector<128x128xf32> -> vector<128x128xf32>
      %c0_8 = arith.constant 0 : index
      %c0_9 = arith.constant 0 : index
      %c0_10 = arith.constant 0 : index
      %20 = vector.load %arg7[%c0_8, %c0_9, %c0_10] : memref<1x128x1xf32, #tpu.memory_space<vmem>>, vector<1x128x1xf32>
      %21 = vector.shape_cast %20 : vector<1x128x1xf32> to vector<128x1xf32>
      %c0_11 = arith.constant 0 : index
      %c0_12 = arith.constant 0 : index
      %c0_13 = arith.constant 0 : index
      %22 = vector.load %arg8[%c0_11, %c0_12, %c0_13] : memref<1x1x128xf32, #tpu.memory_space<vmem>>, vector<1x1x128xf32>
      %23 = vector.shape_cast %22 : vector<1x1x128xf32> to vector<1x128xf32>
      %24 = vector.broadcast %21 : vector<128x1xf32> to vector<128x128xf32>
      %25 = arith.subf %24, %19 : vector<128x128xf32>
      %26 = vector.broadcast %23 : vector<1x128xf32> to vector<128x128xf32>
      %27 = arith.addf %25, %26 : vector<128x128xf32>
      %cst_14 = arith.constant 0.000000e+00 : f32
      %28 = vector.broadcast %cst_14 : f32 to vector<128x128xf32>
      %29 = arith.maximumf %27, %28 : vector<128x128xf32>
      %cst_15 = arith.constant 0.000000e+00 : f32
      %30 = vector.broadcast %cst_15 : f32 to vector<128x128xf32>
      %31 = arith.subf %30, %29 : vector<128x128xf32>
      %32 = math.exp %31 : vector<128x128xf32>
      %33 = arith.cmpi sgt, %arg2, %arg1 : i32
      %34 = arith.andi %7, %33 : i1
      %cst_16 = arith.constant 2.000000e+00 : f32
      %cst_17 = arith.constant 1.000000e+00 : f32
      %35 = arith.select %34, %cst_16, %cst_17 : f32
      %36 = vector.shape_cast %32 : vector<128x128xf32> to vector<16x8x128xf32>
      %cst_18 = arith.constant dense<0.000000e+00> : vector<8x128xf32>
      %37 = vector.multi_reduction <add>, %36, %cst_18 [0] : vector<16x8x128xf32> to vector<8x128xf32>
      %c0_19 = arith.constant 0 : index
      %c0_20 = arith.constant 0 : index
      %c0_21 = arith.constant 0 : index
      %c0_22 = arith.constant 0 : index
      %38 = vector.load %arg9[%c0_19, %c0_20, %c0_21, %c0_22] : memref<1x1x8x128xf32, #tpu.memory_space<vmem>>, vector<1x1x8x128xf32>
      %39 = vector.broadcast %35 : f32 to vector<8x128xf32>
      %40 = arith.mulf %39, %37 : vector<8x128xf32>
      %41 = vector.shape_cast %40 : vector<8x128xf32> to vector<1x1x8x128xf32>
      %42 = arith.addf %38, %41 : vector<1x1x8x128xf32>
      %c0_23 = arith.constant 0 : index
      %c0_24 = arith.constant 0 : index
      %c0_25 = arith.constant 0 : index
      %c0_26 = arith.constant 0 : index
      %43 = vector.load %arg9[%c0_23, %c0_24, %c0_25, %c0_26] : memref<1x1x8x128xf32, #tpu.memory_space<vmem>>, vector<1x1x8x128xf32>
      tpu.vector_store %arg9[%c0_23, %c0_24, %c0_25, %c0_26], %42 {strides = array<i32>} : memref<1x1x8x128xf32, #tpu.memory_space<vmem>>, vector<1x1x8x128xf32>,
    } else {
    }
    return
  }
  func.func @transform_0(%arg0: i32, %arg1: i32, %arg2: i32, %arg3: memref<6xi32, #tpu.memory_space<smem>>, %arg4: memref<6xi32, #tpu.memory_space<smem>>) -> (i32, i32, i32) {
    %0 = arith.index_cast %arg0 : i32 to index
    %1 = memref.load %arg3[%0] : memref<6xi32, #tpu.memory_space<smem>>
    %c0_i32 = arith.constant 0 : i32
    %c0_i32_0 = arith.constant 0 : i32
    return %1, %arg1, %c0_i32 : i32, i32, i32
  }
  func.func @transform_1(%arg0: i32, %arg1: i32, %arg2: i32, %arg3: memref<6xi32, #tpu.memory_space<smem>>, %arg4: memref<6xi32, #tpu.memory_space<smem>>) -> (i32, i32, i32) {
    %0 = arith.index_cast %arg0 : i32 to index
    %1 = memref.load %arg4[%0] : memref<6xi32, #tpu.memory_space<smem>>
    %c0_i32 = arith.constant 0 : i32
    %c0_i32_0 = arith.constant 0 : i32
    return %1, %arg2, %c0_i32 : i32, i32, i32
  }
  func.func @transform_2(%arg0: i32, %arg1: i32, %arg2: i32, %arg3: memref<6xi32, #tpu.memory_space<smem>>, %arg4: memref<6xi32, #tpu.memory_space<smem>>) -> (i32, i32, i32) {
    %0 = arith.index_cast %arg0 : i32 to index
    %1 = memref.load %arg3[%0] : memref<6xi32, #tpu.memory_space<smem>>
    %c0_i32 = arith.constant 0 : i32
    %c0_i32_0 = arith.constant 0 : i32
    return %1, %arg1, %c0_i32 : i32, i32, i32
  }
  func.func @transform_3(%arg0: i32, %arg1: i32, %arg2: i32, %arg3: memref<6xi32, #tpu.memory_space<smem>>, %arg4: memref<6xi32, #tpu.memory_space<smem>>) -> (i32, i32, i32) {
    %0 = arith.index_cast %arg0 : i32 to index
    %1 = memref.load %arg4[%0] : memref<6xi32, #tpu.memory_space<smem>>
    %c0_i32 = arith.constant 0 : i32
    %c0_i32_0 = arith.constant 0 : i32
    return %1, %c0_i32, %arg2 : i32, i32, i32
  }
  func.func @transform_4(%arg0: i32, %arg1: i32, %arg2: i32, %arg3: memref<6xi32, #tpu.memory_space<smem>>, %arg4: memref<6xi32, #tpu.memory_space<smem>>) -> (i32, i32, i32, i32) {
    %c0_i32 = arith.constant 0 : i32
    %c0_i32_0 = arith.constant 0 : i32
    %c0_i32_1 = arith.constant 0 : i32
    return %arg0, %arg1, %c0_i32, %c0_i32_0 : i32, i32, i32, i32
  }
}

</mosaic_0001>

<bundles_post_ra>
// kernel: tpu_custom_call.1
= control target key start
LH: loop header
LB: loop body
LE: loop exit
PB: predicated region body
PF: predicated region fallthrough
CT: control target
= control target key end

     0   :  { %s2656_s0 = inlined_call_operand.hbm [shape: s32[6], index: 0, kind: input, shape index: {}]   ;;  %s2657_s2 = inlined_call_operand.hbm [shape: f32[3,128,32], index: 2, kind: input, shape index: {}]   ;;  %s2658_s3 = inlined_call_operand.hbm [shape: f32[3,128,32], index: 3, kind: input, shape index: {}]   ;;  %s2659_s4 = inlined_call_operand.hbm [shape: f32[3,128,1], index: 4, kind: input, shape index: {}]   ;;  %s2660_s5 = inlined_call_operand.hbm [shape: f32[3,1,128], index: 5, kind: input, shape index: {}]   ;;  %s2661_s6 = inlined_call_operand.hbm [shape: f32[6,1,8,128], index: 6, kind: output, shape index: {}]   ;;  %s2662_s1 = inlined_call_operand.hbm [shape: s32[6], index: 1, kind: input, shape index: {}]  }
   0x1   :  { %2686 = sst [smem:[#allocation41_spill]] %s2657_s2  ;;  %s1527_s23 = scalar_lea.hbm %s2656_s0, 16 }
   0x2   :  { %2687 = sst [smem:[#allocation42_spill]] %s2658_s3  ;;  %p1528_p0 = scmp.ne.s32.totalorder %s2656_s0, %s1527_s23 }
   0x3   :  { %2688 = sst [smem:[#allocation43_spill]] %s2660_s5  ;;  %p1531_p1 = scmp.lt.u32.totalorder %s1527_s23, %s2656_s0 }
   0x4   :  { %2689 = sst [smem:[#allocation44_spill]] %s2661_s6 }
   0x5   :  { %p1533_p2 = pnand %p1531_p1, %p1528_p0 }
   0x7   :  { %1536 = shalt.err (!%p1533_p2)  }
   0x8   :  { %s1861_s28 = smov [#allocation3]   ;;  %s1537_s9 = scalar_lea.hbm %s2662_s1, 16 }
   0x9   :  { %12 = dma.hbm_to_smem %s2656_s0, 16, %s1861_s28, [#allocation2] }
   0xa   :  { %p1538_p3 = scmp.ne.s32.totalorder %s2662_s1, %s1537_s9  ;;  %p1541_p4 = scmp.lt.u32.totalorder %s1537_s9, %s2662_s1 }
   0xc   :  { %p1543_p5 = pnand %p1541_p4, %p1538_p3 }
   0xe   :  { %1546 = shalt.err (!%p1543_p5)  }
   0xf   :  { %s1862_s14 = smov [#allocation4]  }
  0x10   :  { %14 = dma.hbm_to_smem %s2662_s1, 16, %s1862_s14, [#allocation2] }
  0x11   :  { %1767 = dma.done.wait [#allocation2], 32 }
  0x12   :  { %1768 = vsyncadd [#allocation2], 4294967264 }
  0x13   :  { %16 = sfence }
  0x14   :  { %17 = vsyncpa [#allocation6], 0 }
  0x15   :  { %19 = vsyncpa [#allocation6 + $0x1], 0 }
  0x16   :  { %20 = vsyncpa [#allocation9], 0 }
  0x17   :  { %22 = vsyncpa [#allocation9 + $0x1], 0 }
  0x18   :  { %23 = vsyncpa [#allocation12], 0 }
  0x19   :  { %25 = vsyncpa [#allocation12 + $0x1], 0 }
  0x1a   :  { %26 = vsyncpa [#allocation7], 0 }
  0x1b   :  { %28 = vsyncpa [#allocation7 + $0x1], 0  ;;  %s1930_s0 = smov 0   ;;  %s1932_s17 = smov 0  }
  0x1c   :  { %s1934_s18 = smov 0   ;;  %s1936_s19 = smov 0  }
  0x1d   :  { %s1938_s1 = smov 0   ;;  %s1940_s20 = smov 0  }
  0x1e   :  { %s1942_s21 = smov 0   ;;  %s1944_s22 = smov 0  }
  0x1f   :  { %s1946_s23 = smov 0   ;;  %s1948_s24 = smov 0  }
  0x20   :  { %s1950_s25 = smov 0   ;;  %s1952_s26 = smov 0  }
  0x21   :  { %s1954_s27 = smov 0   ;;  %s1956_s28 = smov 0  }
  0x22   :  { %s1958_s29 = smov 0   ;;  %s1960_s30 = smov 0  }
  0x23   :  { %s1962_s7 = smov 0   ;;  %s1964_s8 = smov 0  }
  0x24 LB: > { %2690 = sst [smem:[#allocation28_spill]] %s1791_s0  ;;  %s2019_s9 = sadd.s32 4294967295, %s1859_s8   ;;  %s1859_s8 = sphi %s1964_s8, %s34_s8   ;;  %s1855_s7 = sphi %s1962_s7, %s2779_s7   ;;  %s1851_s30 = sphi %s1960_s30, %s2778_s30   ;;  %s1847_s29 = sphi %s1958_s29, %s2777_s29   ;;  %s1843_s28 = sphi %s1956_s28, %s2776_s28   ;;  %s1839_s27 = sphi %s1954_s27, %s2775_s27   ;;  %s1835_s26 = sphi %s1952_s26, %s2762_s26   ;;  %s1831_s25 = sphi %s1950_s25, %s2774_s25   ;;  %s1827_s24 = sphi %s1948_s24, %s2773_s24   ;;  %s1823_s23 = sphi %s1946_s23, %s2772_s23   ;;  %s1819_s22 = sphi %s1944_s22, %s2771_s22   ;;  %s1815_s21 = sphi %s1942_s21, %s2770_s21   ;;  %s1811_s20 = sphi %s1940_s20, %s2769_s20   ;;  %s1807_s1 = sphi %s1938_s1, %s2768_s1   ;;  %s1803_s19 = sphi %s1936_s19, %s2767_s19   ;;  %s1799_s18 = sphi %s1934_s18, %s2758_s18   ;;  %s1795_s17 = sphi %s1932_s17, %s2766_s17   ;;  %s1791_s0 = sphi %s1930_s0, %s2765_s0  }
  0x25   : > { %2691 = sst [smem:[#allocation29_spill]] %s1799_s18  ;;  %s1088_s10 = sadd.s32 4294967294, %s1859_s8  }
  0x26   : > { %2692 = sst [smem:[#allocation30_spill]] %s1831_s25  ;;  %s53_s11 = sadd.s32 1, %s1855_s7 }
  0x27   : > { %2693 = sst [smem:[#allocation31_spill]] %s1835_s26  ;;  %p2673_p6 = scmp.eq.s32.totalorder %s1859_s8, 0 }
  0x28   : > { %2694 = sst [smem:[#allocation32_spill]] %s1847_s29  ;;  %p55_p7 = scmp.ge.s32.totalorder %s53_s11, 6 }
  0x29   : > { %2695 = sst [smem:[#allocation33_spill]] %s1851_s30  ;;  %p2674_p8 = scmp.eq.s32.totalorder %s2019_s9, 0 }
  0x2a   : > { %s87_s12 = sld [smem:[#allocation4 + %s1855_s7]]  ;;  %s94_s13 = sadd.s32 1, %s1835_s26 }
  0x2b   : > { %s2781_s11 = smov (%p55_p7, %s53_s11), 0  ;;  %p101_p9 = scmp.ne.s32.totalorder %s1835_s26, %s1831_s25 }
  0x2c   : > { %p107_p10 = scmp.ne.s32.totalorder %s1831_s25, %s1827_s24  ;;  %s88_s14 = sld [smem:[#allocation4 + %s2781_s11]] }
  0x2d   : > { %s177_s15 = ssub.s32 %s1855_s7, %s2781_s11  ;;  %p2037_p11 = por %p101_p9, %p2673_p6 }
  0x2e   : > { %p2043_p12 = por %p107_p10, %p2674_p8  ;;  %p180_p13 = scmp.eq.s32.totalorder %s177_s15, 0 }
  0x2f   : > { %s182_s24 = sadd.s32 1, %s1799_s18  ;;  %p192_p0 = scmp.ne.s32.totalorder %s1799_s18, %s1795_s17 }
  0x30   : > { %s2697_s6 = scalar_select %p2043_p12, 1, 0 }
  0x31   : > { %p193_p1 = scmp.eq.s32.totalorder %s2019_s9, 5  ;;  %p198_p3 = scmp.ne.s32.totalorder %s1795_s17, %s1791_s0 }
  0x32   : > { %2698 = sst [smem:[#allocation34_spill]] %s2697_s6  ;;  %s89_s5 = ssub.s32 %s87_s12, %s88_s14 }
  0x33   : > { %s2052_s30 = scalar_select %p180_p13, %s1799_s18, %s182_s24  }
  0x34   : > { %p2054_p2 = por %p193_p1, %p192_p0  ;;  %p199_p4 = scmp.eq.s32.totalorder %s1088_s10, 5 }
  0x35   : > { %2699 = sst [smem:[#allocation35_spill]] %s2052_s30  ;;  %p92_p5 = scmp.eq.s32.totalorder %s89_s5, 0 }
  0x36   : > { %s2700_s25 = scalar_select %p2054_p2, 1, 0 }
  0x37   : > { %p2060_p7 = por %p199_p4, %p198_p3  ;;  %p2672_p9 = scmp.lt.s32.totalorder %s1859_s8, 6 }
  0x38   : > { %2701 = sst [smem:[#allocation36_spill]] %s2700_s25  ;;  %s243_s24 = sand.u32 1, %s1859_s8  }
  0x39   : > { %s2702_s15 = scalar_select %p2060_p7, 1, 0 }
  0x3a   : > { %s2066_s6 = scalar_select %p92_p5, %s1835_s26, %s94_s13  }
  0x3b   : > { %2703 = sst [smem:[#allocation37_spill]] %s2702_s15  ;;  %s245_s30 = sand.u32 1, %s1835_s26  }
  0x3c   : > { %2704 = sst [smem:[#allocation38_spill]] %s2066_s6  ;;  %s1094_s18 = sshll.u32 %s245_s30, 7 }
  0x3d   : > { %p2074_p10 = pnand %p2672_p9, %p2037_p11  ;;  %s247_s12 = scalar_lea.vmem [#allocation8], %s1094_s18 }
  0x3e   : > { %s1301_s5 = scalar_select %p2037_p11, [#allocation4], [#allocation15] }
  0x3f   : > { %s1302_s10 = scalar_select %p2037_p11, %s1855_s7, 0 }
  0x40   : > { %s2783_s5 = smov (!%p2672_p9, %s1301_s5), [#allocation19]  ;;  %s257_s13 = sshll.u32 %s247_s12, 4  ;;  %s2087_s13 = int_to_ptr.vmem [resolvable:$true] %s257_s13 }
  0x41   : > { %s2785_s10 = smov (!%p2672_p9, %s1302_s10), 0  ;;  %p1101_p13 = scmp.ge.s32.totalorder %s1859_s8, 1 }
  0x42   : > { %s248_s14 = sld [smem:[%s2783_s5 + %s2785_s10]]  ;;  %p308_p0 = scmp.lt.s32.totalorder %s1859_s8, 7 }
  0x43   : > { %s2707_s3 = sld [smem:[#allocation42_spill]]  ;;  %s2103_s5 = scalar_lea.sflag [#allocation9], %s243_s24 }
  0x44   : > { %p2091_p1 = pnand %p1101_p13, %p308_p0  ;;  %s2101_s18 = sld [smem:[#allocation3 + %s1855_s7]] }
  0x45   : > { %p1549_p3 = pneg %p2074_p10 }
  0x46   : > { %s2706_s30 = scalar_select %p2091_p1, 1, 0 }
  0x48   : > { %s1144_s6 = sshll.u32 %s248_s14, 11 }
  0x49   : > { %s2098_s15 = scalar_lea.hbm %s2707_s3, %s1144_s6  ;;  %s1552_s6 = scalar_lea.hbm %s2707_s3, 6144 }
  0x4a   : > { %s1547_s10 = scalar_lea.hbm %s2098_s15, 2048  ;;  %p1553_p13 = scmp.lt.u32.totalorder %s2098_s15, %s2707_s3 }
  0x4b   : > { %p1548_p11 = scmp.ne.s32.totalorder %s2098_s15, %s1547_s10  ;;  %p1554_p0 = scmp.lt.u32.totalorder %s1552_s6, %s1547_s10 }
  0x4c   : > { %p1556_p6 = scmp.lt.u32.totalorder %s1547_s10, %s2098_s15 }
  0x4d   : > { %p1550_p4 = pnand %p1549_p3, %p1548_p11  ;;  %p1555_p9 = por %p1554_p0, %p1553_p13 }
  0x4f   : > { %p1551_p5 = pneg %p1550_p4  ;;  %p1557_p8 = por %p1556_p6, %p1555_p9 }
  0x51   : > { %p1558_p7 = pnand %p1557_p8, %p1551_p5 }
  0x53   : > { %1561 = shalt.err (!%p1558_p7)
}
  0x54   : > { %s1562_s24 = scalar_lea.vmem %s2087_s13, 2048  ;;  %s1863_s12 = smov [#allocation8]  }
  0x55   : > { %p1563_p11 = scmp.ne.s32.totalorder %s2087_s13, %s1562_s24  ;;  %s1567_s26 = sshll.u32 %s1863_s12, 4  ;;  %s1568_s26 = int_to_ptr.vmem [resolvable:$false] %s1567_s26 }
  0x56   : > { %s1569_s14 = scalar_lea.vmem %s1568_s26, 4096  ;;  %p1570_p12 = scmp.lt.s32.totalorder %s2087_s13, %s1568_s26 }
  0x57   : > { %p1565_p4 = pnand %p1563_p11, %p1549_p3  ;;  %p1571_p13 = scmp.lt.s32.totalorder %s1569_s14, %s1562_s24 }
  0x59   : > { %p1566_p2 = pneg %p1565_p4  ;;  %p1572_p0 = por %p1571_p13, %p1570_p12 }
  0x5b   : > { %p1573_p6 = pnand %p1572_p0, %p1566_p2 }
  0x5d   : > { %1576 = shalt.err (!%p1573_p6)
}
  0x5e   : > { %s2677_s10 = smov 128   ;;  %s2679_s6 = smov 8  }
  0x5f   : > { %1326 = dma.hbm_to_vmem [thread:$0]  (!%p2074_p10), %s2098_s15, 2048, %s2087_s13, %s2103_s5, %s2677_s10, %s2677_s10, %s2679_s6  }
  0x60   : > { %s58_s16 = sld [smem:[#allocation3 + %s2781_s11]]  ;;  %p71_p8 = scmp.ne.s32.totalorder %s1847_s29, %s1843_s28 }
  0x61   : > { %p77_p12 = scmp.ne.s32.totalorder %s1843_s28, %s1839_s27  ;;  %s64_s24 = sadd.s32 1, %s1847_s29 }
  0x62   : > { %s219_s12 = sand.u32 1, %s1847_s29   ;;  %p2708_p2 = scmp.eq.s32.totalorder %s2019_s9, 0 }
  0x63   : > { %p2710_p9 = scmp.eq.s32.totalorder %s1859_s8, 0  ;;  %s1091_s0 = sshll.u32 %s219_s12, 7 }
  0x64   : > { %p2143_p7 = por %p2708_p2, %p77_p12  ;;  %p2711_p10 = scmp.lt.s32.totalorder %s1859_s8, 6 }
  0x65   : > { %p73_p3 = por %p2710_p9, %p71_p8  ;;  %s223_s13 = scalar_lea.vmem [#allocation5], %s1091_s0 }
  0x66   : > { %s2709_s26 = scalar_select %p2143_p7, 1, 0 }
  0x67   : > { %s59_s15 = ssub.s32 %s2101_s18, %s58_s16  ;;  %p2152_p5 = pnand %p2711_p10, %p73_p3 }
  0x68   : > { %p62_p11 = scmp.eq.s32.totalorder %s59_s15, 0  ;;  %s233_s14 = sshll.u32 %s223_s13, 4  ;;  %s2167_s14 = int_to_ptr.vmem [resolvable:$true] %s233_s14 }
  0x69   : > { %s1298_s10 = scalar_select %p73_p3, [#allocation3], [#allocation14] }
  0x6a   : > { %s2157_s6 = scalar_select %p62_p11, %s1847_s29, %s64_s24  }
  0x6b   : > { %s1299_s3 = scalar_select %p73_p3, %s1855_s7, 0 }
  0x6c   : > { %2713 = sst [smem:[#allocation39_spill]] %s2157_s6  ;;  %p2714_p4 = pmov %p2711_p10 }
  0x6d   : > { %s2165_s16 = sld [smem:[#allocation3 + %s1855_s7]]  ;;  %p131_p0 = scmp.ne.s32.totalorder %s1823_s23, %s1819_s22 }
  0x6e   : > { %s2787_s10 = smov (!%p2714_p4, %s1298_s10), [#allocation18]  ;;  %p2715_p13 = pmov %p2714_p4 }
  0x6f   : > { %s2170_s15 = sld [smem:[#allocation3 + %s2781_s11]]  ;;  %p137_p6 = scmp.ne.s32.totalorder %s1819_s22, %s1815_s21 }
  0x70   : > { %s2789_s3 = smov (!%p2715_p13, %s1299_s3), 0  ;;  %p2716_p8 = pmov %p2710_p9 }
  0x71   : > { %s224_s18 = sld [smem:[%s2787_s10 + %s2789_s3]]  ;;  %p2191_p9 = por %p137_p6, %p2708_p2 }
  0x72   : > { %p2180_p12 = por %p131_p0, %p2716_p8  ;;  %s2718_s2 = sld [smem:[#allocation41_spill]] }
  0x73   : > { %s2719_s21 = scalar_select %p2191_p9, 1, 0 }
  0x74   : > { %s2195_s10 = scalar_lea.sflag [#allocation6], %s219_s12  ;;  %p1579_p10 = pneg %p2152_p5 }
  0x77   : > { %s1143_s24 = sshll.u32 %s224_s18, 11 }
  0x78   : > { %s2187_s3 = scalar_lea.hbm %s2718_s2, %s1143_s24  ;;  %s1582_s24 = scalar_lea.hbm %s2718_s2, 6144 }
  0x79   : > { %s1577_s18 = scalar_lea.hbm %s2187_s3, 2048  ;;  %p1583_p13 = scmp.lt.u32.totalorder %s2187_s3, %s2718_s2 }
  0x7a   : > { %p1578_p3 = scmp.ne.s32.totalorder %s2187_s3, %s1577_s18  ;;  %p1584_p0 = scmp.lt.u32.totalorder %s1582_s24, %s1577_s18 }
  0x7b   : > { %p1586_p8 = scmp.lt.u32.totalorder %s1577_s18, %s2187_s3 }
  0x7c   : > { %p1580_p11 = pnand %p1579_p10, %p1578_p3  ;;  %p1585_p6 = por %p1584_p0, %p1583_p13 }
  0x7e   : > { %p1581_p4 = pneg %p1580_p11  ;;  %p1587_p2 = por %p1586_p8, %p1585_p6 }
  0x80   : > { %p1588_p9 = pnand %p1587_p2, %p1581_p4 }
  0x82   : > { %1591 = shalt.err (!%p1588_p9)
}
  0x83   : > { %s1592_s12 = scalar_lea.vmem %s2167_s14, 2048  ;;  %s1866_s25 = smov [#allocation5]  }
  0x84   : > { %p1593_p3 = scmp.ne.s32.totalorder %s2167_s14, %s1592_s12  ;;  %s1597_s29 = sshll.u32 %s1866_s25, 4  ;;  %s1598_s29 = int_to_ptr.vmem [resolvable:$false] %s1597_s29 }
  0x85   : > { %s1599_s0 = scalar_lea.vmem %s1598_s29, 4096  ;;  %p1600_p1 = scmp.lt.s32.totalorder %s2167_s14, %s1598_s29 }
  0x86   : > { %p1595_p11 = pnand %p1593_p3, %p1579_p10  ;;  %p1601_p13 = scmp.lt.s32.totalorder %s1599_s0, %s1592_s12 }
  0x88   : > { %p1596_p7 = pneg %p1595_p11  ;;  %p1602_p0 = por %p1601_p13, %p1600_p1 }
  0x8a   : > { %p1603_p6 = pnand %p1602_p0, %p1596_p7 }
  0x8c   : > { %1606 = shalt.err (!%p1603_p6)
}
  0x8d   : > { %s2720_s13 = smov 8   ;;  %s2721_s18 = smov 128  }
  0x8e   : > { %1321 = dma.hbm_to_vmem [thread:$0]  (!%p2152_p5), %s2187_s3, 2048, %s2167_s14, %s2195_s10, %s2721_s18, %s2721_s18, %s2720_s13  }
  0x8f   : > { %s119_s27 = ssub.s32 %s2165_s16, %s2170_s15  ;;  %s2722_s24 = sand.u32 1, %s1823_s23  }
  0x90   : > { %s1097_s12 = sshll.u32 %s2722_s24, 7  ;;  %p122_p1 = scmp.eq.s32.totalorder %s119_s27, 0 }
  0x91   : > { %s1304_s25 = scalar_select %p2180_p12, [#allocation3], [#allocation16] }
  0x92   : > { %s2723_s29 = sadd.s32 1, %s1823_s23  ;;  %p2725_p7 = scmp.lt.s32.totalorder %s1859_s8, 6 }
  0x93   : > { %s2235_s0 = scalar_select %p122_p1, %s1823_s23, %s2723_s29  }
  0x94   : > { %s1305_s2 = scalar_select %p2180_p12, %s1855_s7, 0 }
  0x95   : > { %2724 = sst [smem:[#allocation40_spill]] %s2235_s0  ;;  %s2791_s25 = smov (!%p2725_p7, %s1304_s25), [#allocation20] }
  0x96   : > { %p2726_p9 = pmov %p2725_p7  ;;  %p2727_p5 = pmov %p2725_p7 }
  0x97   : > { %s271_s15 = scalar_lea.vmem [#allocation10], %s1097_s12  ;;  %s2253_s10 = sld [smem:[#allocation4 + %s1855_s7]] }
  0x98   : > { %s2793_s2 = smov (!%p2726_p9, %s1305_s2), 0  ;;  %p2248_p10 = pnand %p2727_p5, %p2180_p12 }
  0x99   : > { %s272_s16 = sld [smem:[%s2791_s25 + %s2793_s2]]  ;;  %s281_s3 = sshll.u32 %s271_s15, 4  ;;  %s2258_s3 = int_to_ptr.vmem [resolvable:$true] %s281_s3 }
  0x9a   : > { %s2256_s27 = sld [smem:[#allocation4 + %s2781_s11]]  ;;  %p161_p4 = scmp.ne.s32.totalorder %s1811_s20, %s1807_s1 }
  0x9b   : > { %p2729_p12 = scmp.eq.s32.totalorder %s1859_s8, 0  ;;  %p1609_p11 = pneg %p2248_p10 }
  0x9c   : > { %s1612_s15 = scalar_lea.hbm %s2659_s4, 6144 }
  0x9d   : > { %p2271_p2 = por %p161_p4, %p2729_p12 }
  0x9f   : > { %s1145_s24 = sshll.u32 %s272_s16, 11 }
  0xa0   : > { %s2267_s0 = scalar_lea.hbm %s2659_s4, %s1145_s24 }
  0xa1   : > { %s1607_s12 = scalar_lea.hbm %s2267_s0, 2048  ;;  %p1613_p6 = scmp.lt.u32.totalorder %s2267_s0, %s2659_s4 }
  0xa2   : > { %p1608_p3 = scmp.ne.s32.totalorder %s2267_s0, %s1607_s12  ;;  %p1614_p1 = scmp.lt.u32.totalorder %s1612_s15, %s1607_s12 }
  0xa3   : > { %p1616_p9 = scmp.lt.u32.totalorder %s1607_s12, %s2267_s0 }
  0xa4   : > { %p1610_p13 = pnand %p1609_p11, %p1608_p3  ;;  %p1615_p7 = por %p1614_p1, %p1613_p6 }
  0xa6   : > { %p1611_p0 = pneg %p1610_p13  ;;  %p1617_p5 = por %p1616_p9, %p1615_p7 }
  0xa8   : > { %p1618_p4 = pnand %p1617_p5, %p1611_p0 }
  0xaa   : > { %1621 = shalt.err (!%p1618_p4)
}
  0xab   : > { %s1622_s29 = scalar_lea.vmem %s2258_s3, 2048  ;;  %s1867_s25 = smov [#allocation10]  }
  0xac   : > { %p1623_p12 = scmp.ne.s32.totalorder %s2258_s3, %s1622_s29  ;;  %s1627_s16 = sshll.u32 %s1867_s25, 4  ;;  %s1628_s16 = int_to_ptr.vmem [resolvable:$false] %s1627_s16 }
  0xad   : > { %s1629_s24 = scalar_lea.vmem %s1628_s16, 4096  ;;  %p1630_p8 = scmp.lt.s32.totalorder %s2258_s3, %s1628_s16 }
  0xae   : > { %p1625_p3 = pnand %p1623_p12, %p1609_p11  ;;  %p1631_p6 = scmp.lt.s32.totalorder %s1629_s24, %s1622_s29 }
  0xb0   : > { %p1626_p13 = pneg %p1625_p3  ;;  %p1632_p1 = por %p1631_p6, %p1630_p8 }
  0xb2   : > { %p1633_p7 = pnand %p1632_p1, %p1626_p13 }
  0xb4   : > { %1636 = shalt.err (!%p1633_p7)
}
  0xb5   : > { %1331 = dma.hbm_to_vmem [thread:$0]  (!%p2248_p10), %s2267_s0, 2048, %s2258_s3, %s2103_s5, %s2721_s18, %s2721_s18, %s2720_s13  }
  0xb6   : > { %p2731_p8 = scmp.eq.s32.totalorder %s2019_s9, 0  ;;  %p2732_p11 = scmp.ne.s32.totalorder %s1807_s1, %s1803_s19 }
  0xb7   : > { %s149_s12 = ssub.s32 %s2253_s10, %s2256_s27  ;;  %s154_s15 = sadd.s32 1, %s1811_s20 }
  0xb8   : > { %p2309_p0 = por %p2732_p11, %p2731_p8  ;;  %p152_p9 = scmp.eq.s32.totalorder %s149_s12, 0 }
  0xb9   : > { %s291_s6 = sand.u32 1, %s1811_s20   ;;  %p2734_p5 = scmp.lt.s32.totalorder %s1859_s8, 6 }
  0xba   : > { %s1307_s29 = scalar_select %p2271_p2, [#allocation4], [#allocation17] }
  0xbb   : > { %s2320_s25 = scalar_select %p152_p9, %s1811_s20, %s154_s15  }
  0xbc   : > { %s1308_s16 = scalar_select %p2271_p2, %s1855_s7, 0 }
  0xbd   : > { %s2795_s29 = smov (!%p2734_p5, %s1307_s29), [#allocation21]  ;;  %p2735_p4 = pmov %p2734_p5 }
  0xbe   : > { %s294_s13 = scalar_lea.vmem [#allocation11], %s291_s6  ;;  %s2738_s27 = sld [smem:[#allocation43_spill]] }
  0xbf   : > { %s2797_s16 = smov (!%p2735_p4, %s1308_s16), 0  ;;  %p2736_p10 = pmov %p2735_p4 }
  0xc0   : > { %s295_s5 = sld [smem:[%s2795_s29 + %s2797_s16]]  ;;  %s303_s18 = sshll.u32 %s294_s13, 4  ;;  %s2337_s18 = int_to_ptr.vmem [resolvable:$true] %s303_s18 }
  0xc1   : > { %p2333_p12 = pnand %p2736_p10, %p2271_p2  ;;  %s292_s2 = scalar_lea.sflag [#allocation12], %s291_s6 }
  0xc3   : > { %p1639_p3 = pneg %p2333_p12 }
  0xc4   : > { %s2739_s12 = smov %s2738_s27 }
  0xc6   : > { %s1100_s0 = sshll.u32 %s295_s5, 4  ;;  %s1642_s5 = scalar_lea.hbm %s2739_s12, 48 }
  0xc7   : > { %s2342_s24 = scalar_lea.hbm %s2738_s27, %s1100_s0 }
  0xc8   : > { %s1637_s15 = scalar_lea.hbm %s2342_s24, 16  ;;  %p1643_p1 = scmp.lt.u32.totalorder %s2342_s24, %s2739_s12 }
  0xc9   : > { %p1638_p2 = scmp.ne.s32.totalorder %s2342_s24, %s1637_s15  ;;  %p1644_p7 = scmp.lt.u32.totalorder %s1642_s5, %s1637_s15 }
  0xca   : > { %p1646_p11 = scmp.lt.u32.totalorder %s1637_s15, %s2342_s24 }
  0xcb   : > { %p1640_p13 = pnand %p1639_p3, %p1638_p2  ;;  %p1645_p8 = por %p1644_p7, %p1643_p1 }
  0xcd   : > { %p1641_p6 = pneg %p1640_p13  ;;  %p1647_p9 = por %p1646_p11, %p1645_p8 }
  0xcf   : > { %p1648_p5 = pnand %p1647_p9, %p1641_p6 }
  0xd1   : > { %1651 = shalt.err (!%p1648_p5)
}
  0xd2   : > { %s1652_s6 = scalar_lea.vmem %s2337_s18, 16  ;;  %s1868_s3 = smov [#allocation11]  }
  0xd3   : > { %p1653_p4 = scmp.ne.s32.totalorder %s2337_s18, %s1652_s6  ;;  %s1657_s10 = sshll.u32 %s1868_s3, 4  ;;  %s1658_s10 = int_to_ptr.vmem [resolvable:$false] %s1657_s10 }
  0xd4   : > { %s1659_s27 = scalar_lea.vmem %s1658_s10, 32  ;;  %p1660_p13 = scmp.lt.s32.totalorder %s2337_s18, %s1658_s10 }
  0xd5   : > { %p1655_p10 = pnand %p1653_p4, %p1639_p3  ;;  %p1661_p1 = scmp.lt.s32.totalorder %s1659_s27, %s1652_s6 }
  0xd7   : > { %p1656_p2 = pneg %p1655_p10  ;;  %p1662_p7 = por %p1661_p1, %p1660_p13 }
  0xd9   : > { %p1663_p8 = pnand %p1662_p7, %p1656_p2 }
  0xdb   : > { %1666 = shalt.err (!%p1663_p8)
}
  0xdc   : > { %1336 = dma.hbm_to_vmem [thread:$0]  (!%p2333_p12), %s2342_s24, 16, %s2337_s18, %s292_s2  }
  0xdd   : > { %p2740_p6 = scmp.ne.s32.totalorder %s2706_s30, 0 }
  0xde   : > { %s314_s15 = sand.u32 (!%p2740_p6), 1, %s1843_s28   ;;  %p2741_p3 = scmp.ne.s32.totalorder (!%p2740_p6), %s2709_s26, 0 }
  0xdf   : > { %312 = sbr.rel (%p2740_p6) target bundleno = 595 (0x253), region = 36  ;;  %s1102_s29 = sshll.u32 (!%p2740_p6), %s314_s15, 7 }
  0xe0   : > { %s315_s16 = scalar_lea.sflag (!%p2740_p6), [#allocation6], %s314_s15  ;;  %s2372_s5 = scalar_lea.vmem (!%p2740_p6), [#allocation5], %s1102_s29 }
  0xe6   : > { %1770 = dma.done.wait (%p2741_p3), %s315_s16, 2048  }
  0xe7   : > { %1772 = vsyncadd (%p2741_p3), %s315_s16, 4294965248  ;;  %s2742_s19 = sld [smem:[#allocation30_spill]]  ;;  %s2743_s13 = sld [smem:[#allocation34_spill]] }
  0xe8   : > { %s323_s0 = sand.u32 1, %s2019_s9  }
  0xe9   : > { %s324_s30 = scalar_lea.sflag [#allocation9], %s323_s0 }
  0xed   : > { %s325_s18 = sand.u32 1, %s2742_s19   ;;  %p2744_p12 = scmp.ne.s32.totalorder %s2743_s13, 0 }
  0xee   : > { %s1103_s24 = sshll.u32 %s325_s18, 7 }
  0xef   : > { %s2380_s2 = scalar_lea.vmem [#allocation8], %s1103_s24 }
  0xf0   : > { %1774 = dma.done.wait (%p2744_p12), %s324_s30, 2048  }
  0xf1   : > { %1776 = vsyncadd (%p2744_p12), %s324_s30, 4294965248  ;;  %s334_s6 = sand.u32 1, %s1819_s22   ;;  %p2745_p11 = scmp.ne.s32.totalorder %s2719_s21, 0 }
  0xf2   : > { %s1104_s3 = sshll.u32 %s334_s6, 7 }
  0xf3   : > { %s2387_s26 = scalar_lea.vmem [#allocation10], %s1104_s3 }
  0xf4   : > { %1778 = dma.done.wait (%p2745_p11), %s324_s30, 2048  }
  0xf5   : > { %1780 = vsyncadd (%p2745_p11), %s324_s30, 4294965248  ;;  %s341_s9 = sand.u32 1, %s1807_s1  }
  0xf6   : > { %s342_s10 = scalar_lea.sflag [#allocation12], %s341_s9  ;;  %s2394_s27 = scalar_lea.vmem [#allocation11], %s341_s9 }
  0xf7   : > { %1782 = dma.done.wait (%p2309_p0), %s342_s10, 16  }
  0xf8   : > { %1784 = vsyncadd (%p2309_p0), %s342_s10, 4294967280  ;;  %v1869_v0 = vmov 0   ;;  %vm452_vm0 = vcmask 261120   ;;  %v420_v2 = vld [vmem:[%s2380_s2] sm:$0xff]  ;;  %v421_v3 = vld [vmem:[%s2380_s2 + $0x8] sm:$0xff]  ;;  %s2748_s21 = sld [smem:[#allocation33_spill]] }
  0xf9   : > { %1493 = vset.pattern.permute.xlu0 %v1869_v0  ;;  %1494 = vset.pattern.permute.xlu1 %v1869_v0  ;;  %vm2402_vm1 = vmpackc.low %vm452_vm0, %vm452_vm0  ;;  %v422_v4 = vld [vmem:[%s2380_s2 + $0x10] sm:$0xff]  ;;  %v1234_v5 = vpack.c.bf16 %v421_v3, %v420_v2  ;;  %v423_v6 = vld [vmem:[%s2380_s2 + $0x18] sm:$0xff]  ;;  %s380_s14 = sand.u32 1, %s1795_s17   ;;  %s2749_s29 = sld [smem:[#allocation36_spill]] }
  0xfa   : > { %v1240_v7 = vpack.c.bf16 %v423_v6, %v422_v4  ;;  %v404_v8 = vld [vmem:[%s2372_s5] sm:$0xff]  ;;  %v425_v11 = vld [vmem:[%s2380_s2 + $0x28] sm:$0xff]  ;;  %v696_v16 = vld [vmem:[%s2387_s26 + $0x10] sm:$0xff]  ;;  %s1105_s15 = sshll.u32 %s380_s14, 3  ;;  %s2750_s18 = sld [smem:[#allocation44_spill]] }
  0xfb   : > { %1236 = vmatprep.subr.msk.bf16.mxu0 %vm2402_vm1, %v1234_v5  ;;  %1282 = vmatprep.subr.msk.bf16.mxu1 %vm2402_vm1, %v1234_v5  ;;  %v412_v9 = vld [vmem:[%s2372_s5 + $0x40] sm:$0xff]  ;;  %v436_v12 = vmul.f32 2.0, %v404_v8  ;;  %v695_v17 = vld [vmem:[%s2387_s26 + $0x8] sm:$0xff]  ;;  %v426_v18 = vld [vmem:[%s2380_s2 + $0x30] sm:$0xff]  ;;  %s918_s30 = scalar_lea.sflag [#allocation7], %s380_s14  ;;  %s1870_s3 = smov [#allocation13]  }
  0xfc   : > { %1239 = vmatpush3.bf16.xpose.msk.msra.mxu0 %vm2402_vm1, %v1234_v5  ;;  %1290 = vmatpush3.bf16.xpose.msk.msra.mxu1 %vm2402_vm1, %v1234_v5  ;;  %v424_v10 = vld [vmem:[%s2380_s2 + $0x20] sm:$0xff]  ;;  %v444_v13 = vmul.f32 2.0, %v412_v9  ;;  %v427_v19 = vld [vmem:[%s2380_s2 + $0x38] sm:$0xff]  ;;  %v699_v23 = vld [vmem:[%s2387_s26 + $0x28] sm:$0xff] }
  0xfd   : > { %1242 = vmatprep.subr.msk.bf16.mxu0 %vm2402_vm1, %v1240_v7  ;;  %1283 = vmatprep.subr.msk.bf16.mxu1 %vm2402_vm1, %v1240_v7  ;;  %v1246_v14 = vpack.c.bf16 %v425_v11, %v424_v10  ;;  %v694_v15 = vld [vmem:[%s2387_s26] sm:$0xff]  ;;  %v697_v20 = vld [vmem:[%s2387_s26 + $0x18] sm:$0xff]  ;;  %v1252_v22 = vpack.c.bf16 %v427_v19, %v426_v18  ;;  %v700_v24 = vld [vmem:[%s2387_s26 + $0x30] sm:$0xff] }
  0xfe   : > { %1210 = vmatprep.mubr.msk.f32.mxu0 %vm452_vm0, %v436_v12  ;;  %1222 = vmatprep.mubr.msk.f32.mxu1 %vm452_vm0, %v444_v13  ;;  %v698_v21 = vld [vmem:[%s2387_s26 + $0x20] sm:$0xff]  ;;  %v429_v26 = vld [vmem:[%s2380_s2 + $0x48] sm:$0xff]  ;;  %v701_v27 = vld [vmem:[%s2387_s26 + $0x38] sm:$0xff]  ;;  %s1140_s16 = sshll.u32 %s2748_s21, 7 }
  0xff   : > { %713 = vperm.xlu0 %1493, %v694_v15   ;;  %723 = vperm.xlu1 %1494, %v696_v16   ;;  %v428_v25 = vld [vmem:[%s2380_s2 + $0x40] sm:$0xff]  ;;  %v703_v30 = vld [vmem:[%s2387_s26 + $0x48] sm:$0xff]  ;;  %v704_v31 = vld [vmem:[%s2387_s26 + $0x50] sm:$0xff]  ;;  %p2752_p9 = scmp.ne.s32.totalorder %s2749_s29, 0 }
 0x100   : > { %v702_v28 = vld [vmem:[%s2387_s26 + $0x40] sm:$0xff]  ;;  %v1258_v29 = vpack.c.bf16 %v429_v26, %v428_v25  ;;  %v430_v32 = vld [vmem:[%s2380_s2 + $0x50] sm:$0xff]  ;;  %v431_v33 = vld [vmem:[%s2380_s2 + $0x58] sm:$0xff]  ;;  %s2567_s24 = scalar_lea.hbm %s2750_s18, %s1140_s16 }
 0x101   : > { %v705_v34 = vld [vmem:[%s2387_s26 + $0x58] sm:$0xff]  ;;  %v706_v35 = vld [vmem:[%s2387_s26 + $0x60] sm:$0xff]  ;;  %v1264_v36 = vpack.c.bf16 %v431_v33, %v430_v32  ;;  %v707_v37 = vld [vmem:[%s2387_s26 + $0x68] sm:$0xff] }
 0x102   : > { %v708_v38 = vld [vmem:[%s2387_s26 + $0x70] sm:$0xff]  ;;  %v432_v39 = vld [vmem:[%s2380_s2 + $0x60] sm:$0xff]  ;;  %v433_v40 = vld [vmem:[%s2380_s2 + $0x68] sm:$0xff] }
 0x103   : > { %718 = vperm.xlu0 %1493, %v695_v17   ;;  %728 = vperm.xlu1 %1494, %v697_v20   ;;  %v709_v41 = vld [vmem:[%s2387_s26 + $0x78] sm:$0xff]  ;;  %v1270_v42 = vpack.c.bf16 %v433_v40, %v432_v39  ;;  %v434_v43 = vld [vmem:[%s2380_s2 + $0x70] sm:$0xff]  ;;  %v405_v46 = vld [vmem:[%s2372_s5 + $0x8] sm:$0xff]  ;;  %s1671_s26 = sshll.u32 %s1870_s3, 4  ;;  %s1672_s26 = int_to_ptr.vmem [resolvable:$false] %s1671_s26 }
 0x104   : > { %1245 = vmatpush3.bf16.xpose.msk.msra.mxu0 %vm2402_vm1, %v1240_v7  ;;  %1291 = vmatpush3.bf16.xpose.msk.msra.mxu1 %vm2402_vm1, %v1240_v7  ;;  %v435_v44 = vld [vmem:[%s2380_s2 + $0x78] sm:$0xff]  ;;  %v413_v47 = vld [vmem:[%s2372_s5 + $0x48] sm:$0xff]  ;;  %v406_v48 = vld [vmem:[%s2372_s5 + $0x10] sm:$0xff]  ;;  %v437_v50 = vmul.f32 2.0, %v405_v46  ;;  %s2751_s2 = smov %s2750_s18  ;;  %s1673_s9 = scalar_lea.vmem %s1672_s26, 256 }
 0x105   : > { %1248 = vmatprep.subr.msk.bf16.mxu0 %vm2402_vm1, %v1246_v14  ;;  %1284 = vmatprep.subr.msk.bf16.mxu1 %vm2402_vm1, %v1246_v14  ;;  %v1276_v45 = vpack.c.bf16 %v435_v44, %v434_v43  ;;  %v414_v49 = vld [vmem:[%s2372_s5 + $0x50] sm:$0xff]  ;;  %v445_v51 = vmul.f32 2.0, %v413_v47  ;;  %v438_v52 = vmul.f32 2.0, %v406_v48  ;;  %v407_v54 = vld [vmem:[%s2372_s5 + $0x18] sm:$0xff]  ;;  %v408_v56 = vld [vmem:[%s2372_s5 + $0x20] sm:$0xff] }
 0x106   : > { %v446_v53 = vmul.f32 2.0, %v414_v49  ;;  %v415_v55 = vld [vmem:[%s2372_s5 + $0x58] sm:$0xff]  ;;  %v416_v57 = vld [vmem:[%s2372_s5 + $0x60] sm:$0xff]  ;;  %v439_v58 = vmul.f32 2.0, %v407_v54  ;;  %v440_v60 = vmul.f32 2.0, %v408_v56  ;;  %v409_v62 = vld [vmem:[%s2372_s5 + $0x28] sm:$0xff] }
 0x107   : > { %733 = vperm.xlu0 %1493, %v698_v21   ;;  %738 = vperm.xlu1 %1494, %v699_v23   ;;  %v447_v59 = vmul.f32 2.0, %v415_v55  ;;  %v448_v61 = vmul.f32 2.0, %v416_v57  ;;  %v417_v63 = vld [vmem:[%s2372_s5 + $0x68] sm:$0xff]  ;;  %v410_v0 = vld [vmem:[%s2372_s5 + $0x30] sm:$0xff]  ;;  %v441_v2 = vmul.f32 2.0, %v409_v62  ;;  %v411_v6 = vld [vmem:[%s2372_s5 + $0x38] sm:$0xff] }
 0x108   : > { %v418_v1 = vld [vmem:[%s2372_s5 + $0x70] sm:$0xff]  ;;  %v449_v3 = vmul.f32 2.0, %v417_v63  ;;  %v442_v4 = vmul.f32 2.0, %v410_v0  ;;  %v419_v7 = vld [vmem:[%s2372_s5 + $0x78] sm:$0xff]  ;;  %v443_v8 = vmul.f32 2.0, %v411_v6  ;;  %s382_s5 = scalar_lea.vmem [#allocation13], %s1105_s15 }
 0x109   : > { %v450_v5 = vmul.f32 2.0, %v418_v1  ;;  %v451_v9 = vmul.f32 2.0, %v419_v7  ;;  %v2537_v19 = vld [vmem:[%s2394_s27] ss:$0 sm:$0xff]  ;;  %s932_s19 = sshll.u32 %s382_s5, 4  ;;  %s2569_s19 = int_to_ptr.vmem [resolvable:$true] %s932_s19 }
 0x10a   : > { %s1667_s6 = scalar_lea.vmem %s2569_s19, 128  ;;  %p1674_p10 = scmp.lt.s32.totalorder %s2569_s19, %s1672_s26 }
 0x10b   : > { %743 = vperm.xlu0 %1493, %v700_v24   ;;  %748 = vperm.xlu1 %1494, %v701_v27   ;;  %p1668_p0 = scmp.ne.s32.totalorder %s2569_s19, %s1667_s6  ;;  %p1675_p2 = scmp.lt.s32.totalorder %s1673_s9, %s1667_s6 }
 0x10c   : > { %1251 = vmatpush3.bf16.xpose.msk.msra.mxu0 %vm2402_vm1, %v1246_v14  ;;  %1292 = vmatpush3.bf16.xpose.msk.msra.mxu1 %vm2402_vm1, %v1246_v14 }
 0x10d   : > { %1254 = vmatprep.subr.msk.bf16.mxu0 %vm2402_vm1, %v1252_v22  ;;  %1285 = vmatprep.subr.msk.bf16.mxu1 %vm2402_vm1, %v1252_v22  ;;  %p1669_p5 = pnand %p1668_p0, %p2752_p9  ;;  %p1676_p13 = por %p1675_p2, %p1674_p10 }
 0x10f   : > { %753 = vperm.xlu0 %1493, %v702_v28   ;;  %758 = vperm.xlu1 %1494, %v703_v30   ;;  %p1670_p4 = pneg %p1669_p5 }
 0x111   : > { %p1677_p1 = pnand %p1676_p13, %p1670_p4 }
 0x113   : > { %763 = vperm.xlu0 %1493, %v704_v31   ;;  %768 = vperm.xlu1 %1494, %v705_v34  }
 0x114   : > { %1257 = vmatpush3.bf16.xpose.msk.msra.mxu0 %vm2402_vm1, %v1252_v22  ;;  %1293 = vmatpush3.bf16.xpose.msk.msra.mxu1 %vm2402_vm1, %v1252_v22 }
 0x115   : > { %1260 = vmatprep.subr.msk.bf16.mxu0 %vm2402_vm1, %v1258_v29  ;;  %1286 = vmatprep.subr.msk.bf16.mxu1 %vm2402_vm1, %v1258_v29 }
 0x117   : > { %773 = vperm.xlu0 %1493, %v706_v35   ;;  %778 = vperm.xlu1 %1494, %v707_v37  }
 0x11b   : > { %783 = vperm.xlu0 %1493, %v708_v38   ;;  %788 = vperm.xlu1 %1494, %v709_v41  }
 0x11c   : > { %1263 = vmatpush3.bf16.xpose.msk.msra.mxu0 %vm2402_vm1, %v1258_v29  ;;  %1294 = vmatpush3.bf16.xpose.msk.msra.mxu1 %vm2402_vm1, %v1258_v29 }
 0x11d   : > { %1266 = vmatprep.subr.msk.bf16.mxu0 %vm2402_vm1, %v1264_v36  ;;  %1287 = vmatprep.subr.msk.bf16.mxu1 %vm2402_vm1, %v1264_v36 }
 0x124   : > { %1269 = vmatpush3.bf16.xpose.msk.msra.mxu0 %vm2402_vm1, %v1264_v36  ;;  %1295 = vmatpush3.bf16.xpose.msk.msra.mxu1 %vm2402_vm1, %v1264_v36 }
 0x125   : > { %1272 = vmatprep.subr.msk.bf16.mxu0 %vm2402_vm1, %v1270_v42  ;;  %1288 = vmatprep.subr.msk.bf16.mxu1 %vm2402_vm1, %v1270_v42 }
 0x12c   : > { %1275 = vmatpush3.bf16.xpose.msk.msra.mxu0 %vm2402_vm1, %v1270_v42  ;;  %1296 = vmatpush3.bf16.xpose.msk.msra.mxu1 %vm2402_vm1, %v1270_v42 }
 0x12d   : > { %1278 = vmatprep.subr.msk.bf16.mxu0 %vm2402_vm1, %v1276_v45  ;;  %1289 = vmatprep.subr.msk.bf16.mxu1 %vm2402_vm1, %v1276_v45 }
 0x134   : > { %1281 = vmatpush3.bf16.xpose.msk.msra.mxu0 %vm2402_vm1, %v1276_v45  ;;  %1297 = vmatpush3.bf16.xpose.msk.msra.mxu1 %vm2402_vm1, %v1276_v45 }
 0x13b   : > { %1211 = vmatmul.mubr.msk.f32.vlgmr.msra.gmra.mrb[0].mxu0 %vm452_vm0, %v437_v50  ;;  %1223 = vmatmul.mubr.msk.f32.vlgmr.msra.gmra.mrb[0].mxu1 %vm452_vm0, %v445_v51 }
 0x13c   : > { %1213 = vmatprep.mubr.msk.f32.mxu0 %vm452_vm0, %v438_v52  ;;  %1225 = vmatprep.mubr.msk.f32.mxu1 %vm452_vm0, %v446_v53 }
 0x13f   : > { %1214 = vmatmul.mubr.msk.f32.gmra.mrb[2].mxu0 %vm452_vm0, %v439_v58  ;;  %1226 = vmatmul.mubr.msk.f32.gmra.mrb[2].mxu1 %vm452_vm0, %v447_v59 }
 0x140   : > { %1216 = vmatprep.mubr.msk.f32.mxu0 %vm452_vm0, %v440_v60  ;;  %1228 = vmatprep.mubr.msk.f32.mxu1 %vm452_vm0, %v448_v61 }
 0x143   : > { %1217 = vmatmul.mubr.msk.f32.gmra.mrb[4].mxu0 %vm452_vm0, %v441_v2  ;;  %1229 = vmatmul.mubr.msk.f32.gmra.mrb[4].mxu1 %vm452_vm0, %v449_v3 }
 0x144   : > { %1219 = vmatprep.mubr.msk.f32.mxu0 %vm452_vm0, %v442_v4  ;;  %1231 = vmatprep.mubr.msk.f32.mxu1 %vm452_vm0, %v450_v5 }
 0x147   : > { %1220 = vmatmul.mubr.msk.f32.gmra.mrb[6].mxu0 %vm452_vm0, %v443_v8  ;;  %1232 = vmatmul.mubr.msk.f32.gmra.mrb[6].mxu1 %vm452_vm0, %v451_v9 }
 0x17e   : > { %v714_v10 = vpop.permute.xlu0 %713  ;;  %v724_v11 = vpop.permute.xlu1 %723 }
 0x182   : > { %v719_v12 = vpop.permute.xlu0 %718  ;;  %v729_v13 = vpop.permute.xlu1 %728 }
 0x186   : > { %v734_v14 = vpop.permute.xlu0 %733  ;;  %v739_v15 = vpop.permute.xlu1 %738 }
 0x18a   : > { %v2534_v16 = vpop.permute.xlu0 %743  ;;  %v749_v17 = vpop.permute.xlu1 %748 }
 0x18e   : > { %v754_v25 = vpop.permute.xlu0 %753  ;;  %v759_v36 = vpop.permute.xlu1 %758 }
 0x192   : > { %v764_v45 = vpop.permute.xlu0 %763  ;;  %v769_v59 = vpop.permute.xlu1 %768 }
 0x196   : > { %v774_v5 = vpop.permute.xlu0 %773 }
 0x20e   : > { %v1212_v18 = vpop.f32.mrb[0].mxu0  ;;  %v1224_v20 = vpop.f32.mrb[0].mxu1 }
 0x20f   : > { %v792_v21 = vsub.f32 %v719_v12, %v1212_v18  ;;  %v615_v22 = vpop.f32.mrb[1].mxu0  ;;  %v655_v23 = vpop.f32.mrb[1].mxu1  ;;  %v800_v60 = vsub.f32 %v759_v36, %v1224_v20 }
 0x210   : > { %v791_v24 = vsub.f32 %v714_v10, %v615_v22  ;;  %v799_v52 = vsub.f32 %v754_v25, %v655_v23  ;;  %v779_v12 = vpop.permute.xlu1 %778 }
 0x211   : > { %v814_v26 = vadd.f32 %v2537_v19, %v792_v21  ;;  %v822_v6 = vadd.f32 %v2537_v19, %v800_v60 }
 0x212   : > { %v813_v27 = vadd.f32 %v2537_v19, %v791_v24  ;;  %v1215_v28 = vpop.f32.mrb[2].mxu0  ;;  %v1227_v29 = vpop.f32.mrb[2].mxu1  ;;  %v821_v1 = vadd.f32 %v2537_v19, %v799_v52 }
 0x213   : > { %v830_v30 = vmax.f32 %v814_v26, 0.0  ;;  %v794_v31 = vsub.f32 %v729_v13, %v1215_v28  ;;  %v625_v32 = vpop.f32.mrb[3].mxu0  ;;  %v665_v33 = vpop.f32.mrb[3].mxu1  ;;  %v802_v7 = vsub.f32 %v769_v59, %v1227_v29  ;;  %v838_v22 = vmax.f32 %v822_v6, 0.0 }
 0x214   : > { %v829_v34 = vmax.f32 %v813_v27, 0.0  ;;  %v793_v35 = vsub.f32 %v724_v11, %v625_v32  ;;  %v801_v2 = vsub.f32 %v764_v45, %v665_v33  ;;  %v837_v13 = vmax.f32 %v821_v1, 0.0  ;;  %v784_v29 = vpop.permute.xlu0 %783 }
 0x215   : > { %v846_v37 = vsub.f32 0.0, %v830_v30  ;;  %v816_v38 = vadd.f32 %v2537_v19, %v794_v31  ;;  %v824_v23 = vadd.f32 %v2537_v19, %v802_v7  ;;  %v854_v36 = vsub.f32 0.0, %v838_v22 }
 0x216   : > { %v845_v39 = vsub.f32 0.0, %v829_v34  ;;  %v815_v40 = vadd.f32 %v2537_v19, %v793_v35  ;;  %v1218_v41 = vpop.f32.mrb[4].mxu0  ;;  %v2543_v42 = vpop.f32.mrb[4].mxu1  ;;  %v853_v31 = vsub.f32 0.0, %v837_v13 }
 0x217   : > { %v863_v43 = vmul.f32 1.442695, %v846_v37  ;;  %v832_v44 = vmax.f32 %v816_v38, 0.0  ;;  %v796_v49 = vsub.f32 %v739_v15, %v1218_v41  ;;  %v635_v50 = vpop.f32.mrb[5].mxu0  ;;  %v675_v51 = vpop.f32.mrb[5].mxu1  ;;  %v804_v24 = vsub.f32 %v779_v12, %v2543_v42 }
 0x218   : > { %v861_v46 = vmul.f32 1.442695, %v845_v39  ;;  %v831_v47 = vmax.f32 %v815_v40, 0.0  ;;  %v795_v0 = vsub.f32 %v734_v14, %v635_v50  ;;  %v823_v14 = vadd.f32 %v2537_v19, %v801_v2  ;;  %v789_v37 = vpop.permute.xlu1 %788 }
 0x219   : > { %1495 = vpow2.f32 %v863_v43  ;;  %v848_v48 = vsub.f32 0.0, %v832_v44  ;;  %v818_v56 = vadd.f32 %v2537_v19, %v796_v49  ;;  %v803_v20 = vsub.f32 %v774_v5, %v675_v51 }
 0x21a   : > { %v847_v53 = vsub.f32 0.0, %v831_v47  ;;  %v1221_v54 = vpop.f32.mrb[6].mxu0  ;;  %v2545_v55 = vpop.f32.mrb[6].mxu1  ;;  %1497 = vpow2.f32 %v861_v46  ;;  %v817_v4 = vadd.f32 %v2537_v19, %v795_v0  ;;  %v839_v32 = vmax.f32 %v823_v14, 0.0 }
 0x21b   : > { %v645_v57 = vpop.f32.mrb[7].mxu0  ;;  %v685_v58 = vpop.f32.mrb[7].mxu1  ;;  %v867_v62 = vmul.f32 1.442695, %v848_v48  ;;  %v834_v63 = vmax.f32 %v818_v56, 0.0  ;;  %v798_v3 = vsub.f32 %v749_v17, %v1221_v54  ;;  %v825_v33 = vadd.f32 %v2537_v19, %v803_v20 }
 0x21c   : > { %v865_v61 = vmul.f32 1.442695, %v847_v53  ;;  %v833_v10 = vmax.f32 %v817_v4, 0.0  ;;  %v797_v11 = vsub.f32 %v2534_v16, %v645_v57  ;;  %v805_v35 = vsub.f32 %v784_v29, %v685_v58 }
 0x21d   : > { %v820_v8 = vadd.f32 %v2537_v19, %v798_v3  ;;  %v850_v9 = vsub.f32 0.0, %v834_v63  ;;  %v840_v38 = vmax.f32 %v824_v23, 0.0  ;;  %v826_v39 = vadd.f32 %v2537_v19, %v804_v24 }
 0x21e   : > { %1499 = vpow2.f32 %v865_v61  ;;  %v849_v18 = vsub.f32 0.0, %v833_v10  ;;  %v819_v21 = vadd.f32 %v2537_v19, %v797_v11  ;;  %v806_v42 = vsub.f32 %v789_v37, %v2545_v55 }
 0x21f   : > { %1501 = vpow2.f32 %v867_v62  ;;  %v836_v15 = vmax.f32 %v820_v8, 0.0  ;;  %v871_v26 = vmul.f32 1.442695, %v850_v9  ;;  %v877_v44 = vmul.f32 1.442695, %v853_v31 }
 0x220   : > { %v869_v27 = vmul.f32 1.442695, %v849_v18  ;;  %v835_v16 = vmax.f32 %v819_v21, 0.0  ;;  %v855_v47 = vsub.f32 0.0, %v839_v32  ;;  %v841_v48 = vmax.f32 %v825_v33, 0.0 }
 0x221   : > { %v852_v28 = vsub.f32 0.0, %v836_v15  ;;  %v827_v49 = vadd.f32 %v2537_v19, %v805_v35  ;;  %v879_v50 = vmul.f32 1.442695, %v854_v36  ;;  %v856_v52 = vsub.f32 0.0, %v840_v38 }
 0x222   : > { %1503 = vpow2.f32 %v869_v27  ;;  %v851_v34 = vsub.f32 0.0, %v835_v16  ;;  %v842_v53 = vmax.f32 %v826_v39, 0.0  ;;  %v828_v54 = vadd.f32 %v2537_v19, %v806_v42 }
 0x223   : > { %v1496_v17 = vpop.eup %1495  ;;  %1505 = vpow2.f32 %v871_v26  ;;  %v875_v41 = vmul.f32 1.442695, %v852_v28  ;;  %v881_v56 = vmul.f32 1.442695, %v855_v47  ;;  %v857_v57 = vsub.f32 0.0, %v841_v48 }
 0x224   : > { %v1498_v25 = vpop.eup %1497  ;;  %v873_v43 = vmul.f32 1.442695, %v851_v34  ;;  %v843_v55 = vmax.f32 %v827_v49, 0.0  ;;  %v883_v59 = vmul.f32 1.442695, %v856_v52  ;;  %v858_v60 = vsub.f32 0.0, %v842_v53 }
 0x225   : > { %v897_v30 = vadd.f32 %v1498_v25, %v1496_v17  ;;  %v844_v61 = vmax.f32 %v828_v54, 0.0  ;;  %v885_v0 = vmul.f32 1.442695, %v857_v57 }
 0x226   : > { %1507 = vpow2.f32 %v873_v43  ;;  %v859_v1 = vsub.f32 0.0, %v843_v55  ;;  %v887_v4 = vmul.f32 1.442695, %v858_v60 }
 0x227   : > { %1509 = vpow2.f32 %v875_v41  ;;  %v860_v5 = vsub.f32 0.0, %v844_v61 }
 0x228   : > { %v1500_v40 = vpop.eup %1499  ;;  %1511 = vpow2.f32 %v877_v44  ;;  %v889_v7 = vmul.f32 1.442695, %v859_v1 }
 0x229   : > { %v898_v45 = vadd.f32 %v1500_v40, %v897_v30  ;;  %v1502_v46 = vpop.eup %1501  ;;  %1513 = vpow2.f32 %v879_v50  ;;  %v891_v10 = vmul.f32 1.442695, %v860_v5 }
 0x22a   : > { %1515 = vpow2.f32 %v881_v56 }
 0x22b   : > { %v899_v51 = vadd.f32 %v1502_v46, %v898_v45  ;;  %1517 = vpow2.f32 %v883_v59 }
 0x22c   : > { %v1504_v58 = vpop.eup %1503  ;;  %1519 = vpow2.f32 %v885_v0 }
 0x22d   : > { %v900_v62 = vadd.f32 %v1504_v58, %v899_v51  ;;  %v1506_v63 = vpop.eup %1505  ;;  %1521 = vpow2.f32 %v887_v4 }
 0x22e   : > { %1523 = vpow2.f32 %v889_v7 }
 0x22f   : > { %v901_v2 = vadd.f32 %v1506_v63, %v900_v62  ;;  %1525 = vpow2.f32 %v891_v10 }
 0x230   : > { %v1508_v3 = vpop.eup %1507 }
 0x231   : > { %v902_v19 = vadd.f32 %v1508_v3, %v901_v2  ;;  %v1510_v6 = vpop.eup %1509 }
 0x232   : > { %v1512_v9 = vpop.eup %1511 }
 0x233   : > { %v903_v8 = vadd.f32 %v1510_v6, %v902_v19  ;;  %v1514_v12 = vpop.eup %1513 }
 0x234   : > { %v1516_v14 = vpop.eup %1515 }
 0x235   : > { %v904_v11 = vadd.f32 %v1512_v9, %v903_v8  ;;  %v1518_v17 = vpop.eup %1517 }
 0x236   : > { %v1520_v20 = vpop.eup %1519 }
 0x237   : > { %v905_v13 = vadd.f32 %v1514_v12, %v904_v11  ;;  %v1522_v22 = vpop.eup %1521 }
 0x238   : > { %v1524_v24 = vpop.eup %1523 }
 0x239   : > { %v906_v15 = vadd.f32 %v1516_v14, %v905_v13  ;;  %v1526_v26 = vpop.eup %1525 }
 0x23b   : > { %v907_v18 = vadd.f32 %v1518_v17, %v906_v15 }
 0x23d   : > { %v908_v21 = vadd.f32 %v1520_v20, %v907_v18 }
 0x23f   : > { %v909_v23 = vadd.f32 %v1522_v22, %v908_v21 }
 0x241   : > { %v910_v25 = vadd.f32 %v1524_v24, %v909_v23 }
 0x243   : > { %v911_v27 = vadd.f32 %v1526_v26, %v910_v25 }
 0x245   : > { %916 = vst [vmem:[%s382_s5] sm:$0xff] %v911_v27 }
 0x246   : > { %1680 = shalt.err (!%p1677_p1)
}
 0x247   : > { %s1681_s10 = scalar_lea.hbm %s2567_s24, 128  ;;  %s1685_s14 = scalar_lea.hbm %s2751_s2, 768 }
 0x248   : > { %p1682_p7 = scmp.ne.s32.totalorder %s2567_s24, %s1681_s10  ;;  %p1686_p3 = scmp.lt.u32.totalorder %s2567_s24, %s2751_s2 }
 0x249   : > { %p1687_p12 = scmp.lt.u32.totalorder %s1685_s14, %s1681_s10  ;;  %p1689_p0 = scmp.lt.u32.totalorder %s1681_s10, %s2567_s24 }
 0x24a   : > { %p1683_p8 = pnand %p1682_p7, %p2752_p9 }
 0x24b   : > { %p1688_p11 = por %p1687_p12, %p1686_p3 }
 0x24c   : > { %p1684_p6 = pneg %p1683_p8 }
 0x24d   : > { %p1690_p5 = por %p1689_p0, %p1688_p11 }
 0x24f   : > { %p1691_p4 = pnand %p1690_p5, %p1684_p6 }
 0x251   : > { %1694 = shalt.err (!%p1691_p4)
}
 0x252   : > { %1314 = dma.vmem_to_hbm [thread:$0]  (%p2752_p9), %s2569_s19, 128, %s2567_s24, %s918_s30  }
 0x253 PF: > { %s2753_s5 = sld [smem:[#allocation28_spill]]  ;;  %s2754_s13 = sld [smem:[#allocation37_spill]] }
 0x254   : > { %p1342_p10 = scmp.ge.s32.totalorder %s1859_s8, 2 }
 0x259   : > { %s944_s0 = sand.u32 1, %s2753_s5   ;;  %p2755_p2 = scmp.ne.s32.totalorder %s2754_s13, 0 }
 0x25a   : > { %s945_s18 = scalar_lea.sflag [#allocation7], %s944_s0 }
 0x25b   : > { %p1338_p13 = pnand %p1342_p10, %p2755_p2 }
 0x25d   : > { %1786 = dma.done.wait (!%p1338_p13), %s945_s18, 128  }
 0x25e   : > { %1788 = vsyncadd (!%p1338_p13), %s945_s18, 4294967168  ;;  %s34_s8 = sadd.s32 1, %s1859_s8   ;;  %s2757_s29 = sld [smem:[#allocation29_spill]] }
 0x25f   : > { %p2597_p1 = scmp.ge.s32.totalorder %s34_s8, 8   ;;  %s2758_s18 = sld [smem:[#allocation35_spill]] }
 0x260   : > { %s2759_s24 = sld [smem:[#allocation40_spill]]  ;;  %s2760_s30 = sld [smem:[#allocation30_spill]] }
 0x261   : > { %s2761_s3 = sld [smem:[#allocation31_spill]]  ;;  %s2762_s26 = sld [smem:[#allocation38_spill]] }
 0x262   : > { %s2763_s9 = sld [smem:[#allocation32_spill]]  ;;  %s2764_s10 = sld [smem:[#allocation39_spill]] }
 0x263   : > { %s2765_s0 = smov %s1795_s17  ;;  %s2767_s19 = smov %s1807_s1 }
 0x264   : > { %s2766_s17 = smov %s2757_s29  ;;  %s2768_s1 = smov %s1811_s20 }
 0x265   : > { %s2769_s20 = smov %s2320_s25  ;;  %s2770_s21 = smov %s1819_s22 }
 0x266   : > { %s2771_s22 = smov %s1823_s23  ;;  %s2772_s23 = smov %s2759_s24 }
 0x267   : > { %s2773_s24 = smov %s2760_s30  ;;  %s2774_s25 = smov %s2761_s3 }
 0x268   : > { %s2775_s27 = smov %s1843_s28  ;;  %s2776_s28 = smov %s2763_s9 }
 0x269   : > { %s2777_s29 = smov %s2764_s10  ;;  %s2778_s30 = smov %s1855_s7 }
 0x26a   : > { %s2779_s7 = smov %s2781_s11  ;;  %33 = sbr.rel (!%p2597_p1) target bundleno = 36 (0x24), region = 126 }
 0x271   :  { %950 = vsyncpa [#allocation6], 1 }
 0x272   :  { %952 = vsyncpa [#allocation6 + $0x1], 1 }
 0x273   :  { %953 = vsyncpa [#allocation9], 1 }
 0x274   :  { %955 = vsyncpa [#allocation9 + $0x1], 1 }
 0x275   :  { %956 = vsyncpa [#allocation12], 1 }
 0x276   :  { %958 = vsyncpa [#allocation12 + $0x1], 1 }
 0x277   :  { %959 = vsyncpa [#allocation7], 1 }
 0x278   :  { %961 = vsyncpa [#allocation7 + $0x1], 1 }

</bundles_post_ra>
